<compile_context>
chip_gen: v7x
topology: tpu7x:2x2x1
jax: 0.10.0
libtpu: 0.0.40
codegen_flags: <defaults>
</compile_context>

<pallas_src>
import functools

import jax
import jax.numpy as jnp
from jax import lax
from jax.experimental import pallas as pl
from jax.experimental.pallas import tpu as pltpu

LEAKY_SLOPE = 0.2


def _r1_penalty_kernel(x_ref, w1t_ref, w1p_ref, u_ref, out_ref, *,
                       bn, hw, tile_p, ragged):
    """One grid step = `bn` images x one (C, tile_p) pixel slab.

    Channels on sublanes, pixels on lanes. Discriminator forward + analytic
    input gradient, emitting this block's squared-gradient partial sum
    broadcast into a lane-dense (1,128) row.
    """
    w1t = w1t_ref[...]                      # (F, C)  bf16
    w1p = w1p_ref[...]                      # (C, F)  bf16  == W1 * w2[None, :]
    u = u_ref[...]                          # (C, 1)  f32   == W1 @ w2

    if ragged:
        # lane mask for pixel columns past the true H*W extent (last block)
        start = pl.program_id(1) * tile_p
        lane = lax.broadcasted_iota(jnp.int32, (1, tile_p), 1)
        valid = (start + lane) < hw         # (1, TP)

    acc = jnp.float32(0.0)
    for b in range(bn):                     # bn is small & static (unrolled)
        x = x_ref[b].astype(jnp.bfloat16)   # (C, TP)  pixels on lanes
        # forward: hidden pre-activation  H^T = W1^T @ X^T           (F, TP)
        h_t = jnp.dot(w1t, x, preferred_element_type=jnp.float32)
        # leaky-ReLU "positive" mask; exactly representable in bf16
        m = (h_t > 0).astype(jnp.bfloat16)                            # (F, TP)
        # grad = slope * (W1 @ w2) + (1-slope) * (W1 ⊙ w2) @ m        (C, TP)
        core = jnp.dot(w1p, m, preferred_element_type=jnp.float32)
        grad_t = LEAKY_SLOPE * u + (1.0 - LEAKY_SLOPE) * core

        gsq = grad_t * grad_t                                         # (C, TP)
        if ragged:
            # masking gsq alone is sufficient: each output column depends only
            # on its own input column, and jnp.where is a select (garbage /
            # NaN in the dead branch cannot leak).
            gsq = jnp.where(valid, gsq, 0.0)
        acc = acc + jnp.sum(gsq)

    out_ref[...] = jnp.broadcast_to(acc, (1, 1, 1, 128)).astype(out_ref.dtype)


def r1_gradient_penalty_pallas(real_data_nchw, w1, w2, *,
                               loss_weight=1.0, tile_p=16384,
                               max_images_per_block=8):
    n, c, h, w = real_data_nchw.shape
    hw = h * w
    f = w1.shape[1]

    # NCHW -> (N, C, H*W): pure metadata reshape (no HBM transpose pass).
    x3 = real_data_nchw.reshape(n, c, hw)

    # Tiny weight prep hoisted out of the kernel (and out of the grid loop).
    w1_f32 = w1.astype(jnp.float32)
    w2_f32 = w2.reshape(-1).astype(jnp.float32)
    w1t_bf16 = jnp.transpose(w1_f32).astype(jnp.bfloat16)        # (F, C)
    w1p_bf16 = (w1_f32 * w2_f32[None, :]).astype(jnp.bfloat16)   # (C, F)
    u_col = (w1_f32 @ w2_f32).reshape(c, 1)                      # (C, 1) f32

    # Pixel tile / image-batching selection.
    if hw <= tile_p:
        tp = hw                                    # full extent, never ragged
        max_bn = max(1, min(n, max_images_per_block, tile_p // max(hw, 1)))
        bn = 1
        for d in range(1, max_bn + 1):             # largest divisor of n
            if n % d == 0:
                bn = d
    else:
        tp = max(128, (tile_p // 128) * 128)       # lane-aligned
        bn = 1
    num_blocks = pl.cdiv(hw, tp)
    ragged = (hw % tp) != 0
    grid_i = n // bn

    kernel = functools.partial(_r1_penalty_kernel, bn=bn, hw=hw,
                               tile_p=tp, ragged=ragged)

    # Advisory cost estimate: two (F,C)x(·,TP) matmuls per pixel.
    itemsize = real_data_nchw.dtype.itemsize
    cost = pl.CostEstimate(
        flops=4 * f * c * n * hw,
        transcendentals=0,
        bytes_accessed=(n * c * hw * itemsize
                        + w1t_bf16.size * 2 + w1p_bf16.size * 2 + u_col.size * 4
                        + grid_i * num_blocks * 128 * 4))

    # Raise the scoped VMEM limit only if the default (16 MiB on v5e) would be
    # too tight for the chosen tile; stay well under v7x's 64 MiB physical.
    vmem_need = (2 * bn * c * tp * itemsize        # double-buffered x blocks
                 + f * tp * (4 + 2)                # h_t f32 + mask bf16
                 + c * tp * 4 * 2                  # grad + gsq f32
                 + (1 << 20))                      # slack
    vmem_limit = None
    if vmem_need > 16 * 1024 * 1024:
        vmem_limit = min(int(vmem_need * 2), 48 * 1024 * 1024)

    partials = pl.pallas_call(
        kernel,
        out_shape=jax.ShapeDtypeStruct((grid_i, num_blocks, 1, 128),
                                       jnp.float32),
        grid_spec=pltpu.PrefetchScalarGridSpec(
            num_scalar_prefetch=0,
            grid=(grid_i, num_blocks),
            in_specs=[
                pl.BlockSpec((bn, c, tp), lambda i, j: (i, 0, j)),  # pixel slab
                pl.BlockSpec((f, c), lambda i, j: (0, 0)),          # W1^T
                pl.BlockSpec((c, f), lambda i, j: (0, 0)),          # W1 ⊙ w2
                pl.BlockSpec((c, 1), lambda i, j: (0, 0)),          # W1 @ w2
            ],
            out_specs=pl.BlockSpec((1, 1, 1, 128), lambda i, j: (i, j, 0, 0)),
        ),
        compiler_params=pltpu.CompilerParams(
            dimension_semantics=("parallel", "parallel"),
            vmem_limit_bytes=vmem_limit),
        cost_estimate=cost,
    )(x3, w1t_bf16, w1p_bf16, u_col)

    # tiny cross-block reduction outside the kernel (lane 0 carries the value)
    total_pixels = float(n * hw)
    return jnp.sum(partials[:, :, 0, 0]) * (loss_weight / total_pixels)


# ---- pure-JAX f32 reference (discriminator + autograd), for validation ----
def _disc_ref(x_nchw, w1, w2):
    n, c, h, w = x_nchw.shape
    xp = jnp.transpose(x_nchw, (0, 2, 3, 1)).reshape(n, h * w, c)
    hh = jnp.einsum('npc,cf->npf', xp, w1)
    a = jnp.where(hh > 0, hh, LEAKY_SLOPE * hh)
    return jnp.einsum('npf,f->n', a, w2.reshape(-1))


def _r1_ref(real_nchw, w1, w2, loss_weight):
    grad = jax.grad(lambda x: jnp.sum(_disc_ref(x, w1, w2)))(real_nchw)
    # norm_mode='pixel': ((grad.norm(2, dim=1))**2).mean()
    return jnp.mean(jnp.sum(grad * grad, axis=1)) * loss_weight


if __name__ == "__main__":
    key = jax.random.PRNGKey(0)
    k_x, k_w1, k_w2, k_x2 = jax.random.split(key, 4)

    N, C, H, W = 2, 4, 16, 16
    F = 32
    loss_weight = 1.0

    real_imgs = jax.random.normal(k_x, (N, C, H, W), dtype=jnp.float32)
    w1 = 0.1 * jax.random.normal(k_w1, (C, F), dtype=jnp.float32)
    w2 = jax.random.normal(k_w2, (F,), dtype=jnp.float32)

    loss = r1_gradient_penalty_pallas(real_imgs, w1, w2,
                                      loss_weight=loss_weight)
    loss = jax.block_until_ready(loss)
    ref = _r1_ref(real_imgs, w1, w2, loss_weight)
    # bf16 MXU operands -> slightly loosened tolerance vs the f32 reference
    assert jnp.allclose(loss, ref, rtol=1e-2, atol=1e-3), (loss, ref)

    # ragged H*W case (exercises multi-block grid + lane masking)
    Hr, Wr = 10, 15
    real_ragged = jax.random.normal(k_x2, (N, C, Hr, Wr), dtype=jnp.float32)
    loss_r = r1_gradient_penalty_pallas(real_ragged, w1, w2,
                                        loss_weight=loss_weight, tile_p=128)
    loss_r = jax.block_until_ready(loss_r)
    ref_r = _r1_ref(real_ragged, w1, w2, loss_weight)
    assert jnp.allclose(loss_r, ref_r, rtol=1e-2, atol=1e-3), (loss_r, ref_r)

    print("KERNEL_OK")
</pallas_src>

<mosaic_0001>
module attributes {stable_mosaic.version = 11 : i64} {
  func.func @_r1_penalty_kernel(%arg0: i32, %arg1: i32, %arg2: memref<2x4x256xf32, #tpu.memory_space<vmem>>, %arg3: memref<32x4xbf16, #tpu.memory_space<vmem>>, %arg4: memref<4x32xbf16, #tpu.memory_space<vmem>>, %arg5: memref<4x1xf32, #tpu.memory_space<vmem>>, %arg6: memref<1x1x1x128xf32, #tpu.memory_space<vmem>>) attributes {dimension_semantics = [#tpu.dimension_semantics<parallel>, #tpu.dimension_semantics<parallel>], iteration_bounds = array<i64: 1, 1>, scalar_prefetch = 0 : i64, scratch_operands = 0 : i64, tpu.core_type = #tpu.core_type<tc>, window_params = [{transform_indices = @transform_0, window_bounds = array<i64: 2, 4, 256>}, {pipeline_mode = #tpu.pipeline_mode<synchronous>, transform_indices = @transform_1, window_bounds = array<i64: 32, 4>}, {pipeline_mode = #tpu.pipeline_mode<synchronous>, transform_indices = @transform_2, window_bounds = array<i64: 4, 32>}, {pipeline_mode = #tpu.pipeline_mode<synchronous>, transform_indices = @transform_3, window_bounds = array<i64: 4, 1>}, {transform_indices = @transform_4, window_bounds = array<i64: 1, 1, 1, 128>}]} {
    %c0 = arith.constant 0 : index
    %c0_0 = arith.constant 0 : index
    %0 = vector.load %arg3[%c0, %c0_0] : memref<32x4xbf16, #tpu.memory_space<vmem>>, vector<32x4xbf16>
    %c0_1 = arith.constant 0 : index
    %c0_2 = arith.constant 0 : index
    %1 = vector.load %arg4[%c0_1, %c0_2] : memref<4x32xbf16, #tpu.memory_space<vmem>>, vector<4x32xbf16>
    %c0_3 = arith.constant 0 : index
    %c0_4 = arith.constant 0 : index
    %2 = vector.load %arg5[%c0_3, %c0_4] : memref<4x1xf32, #tpu.memory_space<vmem>>, vector<4x1xf32>
    %c0_5 = arith.constant 0 : index
    %c0_6 = arith.constant 0 : index
    %c0_7 = arith.constant 0 : index
    %3 = vector.load %arg2[%c0_5, %c0_6, %c0_7] : memref<2x4x256xf32, #tpu.memory_space<vmem>>, vector<1x4x256xf32>
    %4 = vector.shape_cast %3 : vector<1x4x256xf32> to vector<4x256xf32>
    %5 = arith.truncf %4 : vector<4x256xf32> to vector<4x256xbf16>
    %cst = arith.constant dense<0.000000e+00> : vector<32x256xf32>
    %6 = tpu.matmul %0, %5, %cst {dimension_numbers = #tpu.dot_dimension_numbers<[1], [0], [0], [1], [0, 0, 1, 1], [], []>} : vector<32x4xbf16>, vector<4x256xbf16>, vector<32x256xf32> -> vector<32x256xf32>
    %cst_8 = arith.constant 0.000000e+00 : f32
    %7 = vector.broadcast %cst_8 : f32 to vector<32x256xf32>
    %8 = arith.cmpf ogt, %6, %7 : vector<32x256xf32>
    %9 = arith.extui %8 : vector<32x256xi1> to vector<32x256xi32>
    %10 = arith.sitofp %9 : vector<32x256xi32> to vector<32x256xf32>
    %11 = arith.truncf %10 : vector<32x256xf32> to vector<32x256xbf16>
    %cst_9 = arith.constant dense<0.000000e+00> : vector<4x256xf32>
    %12 = tpu.matmul %1, %11, %cst_9 {dimension_numbers = #tpu.dot_dimension_numbers<[1], [0], [0], [1], [0, 0, 1, 1], [], []>} : vector<4x32xbf16>, vector<32x256xbf16>, vector<4x256xf32> -> vector<4x256xf32>
    %cst_10 = arith.constant 2.000000e-01 : f32
    %13 = vector.broadcast %cst_10 : f32 to vector<4x1xf32>
    %14 = arith.mulf %13, %2 : vector<4x1xf32>
    %cst_11 = arith.constant 8.000000e-01 : f32
    %15 = vector.broadcast %cst_11 : f32 to vector<4x256xf32>
    %16 = arith.mulf %15, %12 : vector<4x256xf32>
    %17 = vector.broadcast %14 : vector<4x1xf32> to vector<4x256xf32>
    %18 = arith.addf %17, %16 : vector<4x256xf32>
    %19 = arith.mulf %18, %18 : vector<4x256xf32>
    %20 = vector.shape_cast %19 : vector<4x256xf32> to vector<1x4x256xf32>
    %cst_12 = arith.constant dense<0.000000e+00> : vector<1xf32>
    %21 = vector.multi_reduction <add>, %20, %cst_12 [1, 2] : vector<1x4x256xf32> to vector<1xf32>
    %22 = vector.shape_cast %21 : vector<1xf32> to vector<1x1x1xf32>
    %23 = vector.extract %22[0, 0, 0] : f32 from vector<1x1x1xf32>
    %cst_13 = arith.constant 0.000000e+00 : f32
    %24 = arith.addf %cst_13, %23 : f32
    %c1 = arith.constant 1 : index
    %c0_14 = arith.constant 0 : index
    %c0_15 = arith.constant 0 : index
    %25 = vector.load %arg2[%c1, %c0_14, %c0_15] : memref<2x4x256xf32, #tpu.memory_space<vmem>>, vector<1x4x256xf32>
    %26 = vector.shape_cast %25 : vector<1x4x256xf32> to vector<4x256xf32>
    %27 = arith.truncf %26 : vector<4x256xf32> to vector<4x256xbf16>
    %cst_16 = arith.constant dense<0.000000e+00> : vector<32x256xf32>
    %28 = tpu.matmul %0, %27, %cst_16 {dimension_numbers = #tpu.dot_dimension_numbers<[1], [0], [0], [1], [0, 0, 1, 1], [], []>} : vector<32x4xbf16>, vector<4x256xbf16>, vector<32x256xf32> -> vector<32x256xf32>
    %cst_17 = arith.constant 0.000000e+00 : f32
    %29 = vector.broadcast %cst_17 : f32 to vector<32x256xf32>
    %30 = arith.cmpf ogt, %28, %29 : vector<32x256xf32>
    %31 = arith.extui %30 : vector<32x256xi1> to vector<32x256xi32>
    %32 = arith.sitofp %31 : vector<32x256xi32> to vector<32x256xf32>
    %33 = arith.truncf %32 : vector<32x256xf32> to vector<32x256xbf16>
    %cst_18 = arith.constant dense<0.000000e+00> : vector<4x256xf32>
    %34 = tpu.matmul %1, %33, %cst_18 {dimension_numbers = #tpu.dot_dimension_numbers<[1], [0], [0], [1], [0, 0, 1, 1], [], []>} : vector<4x32xbf16>, vector<32x256xbf16>, vector<4x256xf32> -> vector<4x256xf32>
    %cst_19 = arith.constant 2.000000e-01 : f32
    %35 = vector.broadcast %cst_19 : f32 to vector<4x1xf32>
    %36 = arith.mulf %35, %2 : vector<4x1xf32>
    %cst_20 = arith.constant 8.000000e-01 : f32
    %37 = vector.broadcast %cst_20 : f32 to vector<4x256xf32>
    %38 = arith.mulf %37, %34 : vector<4x256xf32>
    %39 = vector.broadcast %36 : vector<4x1xf32> to vector<4x256xf32>
    %40 = arith.addf %39, %38 : vector<4x256xf32>
    %41 = arith.mulf %40, %40 : vector<4x256xf32>
    %42 = vector.shape_cast %41 : vector<4x256xf32> to vector<1x4x256xf32>
    %cst_21 = arith.constant dense<0.000000e+00> : vector<1xf32>
    %43 = vector.multi_reduction <add>, %42, %cst_21 [1, 2] : vector<1x4x256xf32> to vector<1xf32>
    %44 = vector.shape_cast %43 : vector<1xf32> to vector<1x1x1xf32>
    %45 = vector.extract %44[0, 0, 0] : f32 from vector<1x1x1xf32>
    %46 = arith.addf %24, %45 : f32
    %47 = vector.broadcast %46 : f32 to vector<1x1x1x128xf32>
    %c0_22 = arith.constant 0 : index
    %c0_23 = arith.constant 0 : index
    %c0_24 = arith.constant 0 : index
    %c0_25 = arith.constant 0 : index
    %48 = vector.load %arg6[%c0_22, %c0_23, %c0_24, %c0_25] : memref<1x1x1x128xf32, #tpu.memory_space<vmem>>, vector<1x1x1x128xf32>
    tpu.vector_store %arg6[%c0_22, %c0_23, %c0_24, %c0_25], %47 {strides = array<i32>} : memref<1x1x1x128xf32, #tpu.memory_space<vmem>>, vector<1x1x1x128xf32>,
    return
  }
  func.func @transform_0(%arg0: i32, %arg1: i32) -> (i32, i32, i32) {
    %c0_i32 = arith.constant 0 : i32
    %c0_i32_0 = arith.constant 0 : i32
    return %arg0, %c0_i32, %arg1 : i32, i32, i32
  }
  func.func @transform_1(%arg0: i32, %arg1: i32) -> (i32, i32) {
    %c0_i32 = arith.constant 0 : i32
    %c0_i32_0 = arith.constant 0 : i32
    %c0_i32_1 = arith.constant 0 : i32
    return %c0_i32, %c0_i32_0 : i32, i32
  }
  func.func @transform_2(%arg0: i32, %arg1: i32) -> (i32, i32) {
    %c0_i32 = arith.constant 0 : i32
    %c0_i32_0 = arith.constant 0 : i32
    %c0_i32_1 = arith.constant 0 : i32
    return %c0_i32, %c0_i32_0 : i32, i32
  }
  func.func @transform_3(%arg0: i32, %arg1: i32) -> (i32, i32) {
    %c0_i32 = arith.constant 0 : i32
    %c0_i32_0 = arith.constant 0 : i32
    %c0_i32_1 = arith.constant 0 : i32
    return %c0_i32, %c0_i32_0 : i32, i32
  }
  func.func @transform_4(%arg0: i32, %arg1: i32) -> (i32, i32, i32, i32) {
    %c0_i32 = arith.constant 0 : i32
    %c0_i32_0 = arith.constant 0 : i32
    %c0_i32_1 = arith.constant 0 : i32
    return %arg0, %arg1, %c0_i32, %c0_i32_0 : i32, i32, i32, i32
  }
}

</mosaic_0001>

<bundles_post_ra>
// kernel: tpu_custom_call.1
= control target key start
LH: loop header
LB: loop body
LE: loop exit
PB: predicated region body
PF: predicated region fallthrough
CT: control target
= control target key end

     0   :  { %vm48_vm0 = vcmask 1041408   ;;  %v456_v3 = vmov 0   ;;  %s536_s0 = inlined_call_operand.vmem [shape: f32[2,4,256], index: 0, kind: input, shape index: {}]   ;;  %s537_s1 = inlined_call_operand.vmem [shape: bf16[32,4], index: 1, kind: input, shape index: {}]   ;;  %s538_s2 = inlined_call_operand.vmem [shape: bf16[4,32], index: 2, kind: input, shape index: {}]   ;;  %s539_s3 = inlined_call_operand.vmem [shape: f32[4,1], index: 3, kind: input, shape index: {}]   ;;  %s540_s4 = inlined_call_operand.hbm [shape: f32[1,1,1,128], index: 4, kind: output, shape index: {}]  }
   0x1   :  { %v25_v0 = vld [vmem:[%s536_s0] sm:$0xff]  ;;  %87 = vmatprep.mubr.bf16.mxu0 %v456_v3  ;;  %172 = vmatprep.mubr.bf16.mxu1 %v456_v3 }
   0x2   :  { %v27_v1 = vcombine.high %v25_v0, %v25_v0  ;;  %v29_v2 = vpack.c.bf16 %v25_v0, %v25_v0  ;;  %427 = vset.pattern.permute.xlu0 %v456_v3 }
   0x3   :  { %9 = vsyncpa [#allocation3], 0  ;;  %v429_v6 = vld [vmem:[%s537_s1] sm:$0xff]   ;;  %vm41_vm1 = vcmask 31744   ;;  %v430_v7 = vld [vmem:[%s537_s1 + $0x8] sm:$0xff]   ;;  %vm136_vm14 = vcmask 261120  }
   0x4   :  { %v30_v4 = vpack.c.bf16 %v27_v1, %v27_v1  ;;  %v50_v5 = vsel %vm48_vm0, %v29_v2, 0  ;;  %v24_v8 = vld [vmem:[%s539_s3] sm:$0xf]  ;;  %v399_v14 = vld [vmem:[%s536_s0 + $0x8] sm:$0xff]  ;;  %v457_v15 = vmov 1.0|1.0  }
   0x5   :  { %v181_v9 = vmul.f32 0.2, %v24_v8  ;;  %v210_v17 = vcombine.high %v399_v14, %v399_v14  ;;  %v212_v22 = vpack.c.bf16 %v399_v14, %v399_v14  ;;  %v23_v23 = vld [vmem:[%s538_s2] sm:$0x3]  ;;  %vm193_vm15 = vcmask 1043456   ;;  %s458_s24 = smov [#allocation2]  }
   0x6   :  { %379 = vmatprep.subr.msk.bf16.mxu0 %vm48_vm0, %v30_v4  ;;  %s369_s25 = sshll.u32 %s458_s24, 4  ;;  %s370_s25 = int_to_ptr.vmem [resolvable:$true] %s369_s25 }
   0x7   :  { %56 = vmatpush1.bf16.msra.mxu0 %v50_v5  ;;  %186 = vperm.xlu0 %427, %v181_v9   ;;  %v213_v21 = vpack.c.bf16 %v210_v17, %v210_v17  ;;  %v215_v24 = vsel %vm48_vm0, %v212_v22, 0  ;;  %s432_s28 = scalar_lea.vmem %s370_s25, 16  ;;  %s436_s29 = scalar_lea.vmem %s370_s25, 32 }
   0x8   :  { %p433_p0 = scmp.ne.s32.totalorder %s370_s25, %s432_s28  ;;  %p437_p1 = scmp.lt.s32.totalorder %s370_s25, %s370_s25 }
   0x9   :  { %p438_p2 = scmp.lt.s32.totalorder %s436_s29, %s432_s28 }
   0xa   :  { %380 = vmatmul.mubr.msk.bf16.vlgmr.msra.gmra.mrb[0].mxu0 %vm41_vm1, %v429_v6 }
   0xb   :  { %97 = vmatprep.mubr.bf16.mxu0 %v456_v3  ;;  %p439_p3 = por %p438_p2, %p437_p1 }
   0xd   :  { %p440_p4 = pnand %p439_p3, %p433_p0 }
  0x12   :  { %381 = vmatmul.mubr.msk.bf16.gmra.mrb[4].mxu0 %vm41_vm1, %v430_v7 }
  0x13   :  { %333 = vmatprep.mubr.bf16.mxu0 %v456_v3 }
  0x86   :  { %v187_v26 = vpop.permute.xlu0 %186 }
  0xdd   :  { %v89_v10 = vpop.f32.mrb[0].mxu0 }
  0xde   :  { %v91_v11 = vpop.f32.mrb[1].mxu0  ;;  %vm108_vm2 = vcmp.gt.f32.partialorder %v89_v10, 0.0 }
  0xdf   :  { %v93_v12 = vpop.f32.mrb[2].mxu0  ;;  %vm109_vm4 = vcmp.gt.f32.partialorder %v91_v11, 0.0 }
  0xe0   :  { %vm110_vm3 = vcmp.gt.f32.partialorder %v93_v12, 0.0  ;;  %v95_v13 = vpop.f32.mrb[3].mxu0 }
  0xe1   :  { %vm392_vm5 = vmpackc.low %vm110_vm3, %vm108_vm2  ;;  %vm111_vm6 = vcmp.gt.f32.partialorder %v95_v13, 0.0 }
  0xe2   :  { %vm390_vm7 = vmpackc.low %vm111_vm6, %vm109_vm4 }
  0xe3   :  { %391 = vmatprep.subr.msk.bf16.mxu1 %vm390_vm7, %v457_v15 }
  0xe4   :  { %393 = vmatpush1.bf16.msk.msra.mxu1 %vm392_vm5, %v457_v15 }
  0xe5   :  { %v99_v16 = vpop.f32.mrb[4].mxu0 }
  0xe6   :  { %v101_v18 = vpop.f32.mrb[5].mxu0  ;;  %vm112_vm8 = vcmp.gt.f32.partialorder %v99_v16, 0.0 }
  0xe7   :  { %v103_v19 = vpop.f32.mrb[6].mxu0  ;;  %vm113_vm10 = vcmp.gt.f32.partialorder %v101_v18, 0.0 }
  0xe8   :  { %vm114_vm9 = vcmp.gt.f32.partialorder %v103_v19, 0.0  ;;  %v105_v20 = vpop.f32.mrb[7].mxu0 }
  0xe9   :  { %vm396_vm11 = vmpackc.low %vm114_vm9, %vm112_vm8  ;;  %vm115_vm12 = vcmp.gt.f32.partialorder %v105_v20, 0.0 }
  0xea   :  { %vm394_vm13 = vmpackc.low %vm115_vm12, %vm113_vm10 }
  0xeb   :  { %395 = vmatprep.subr.msk.bf16.mxu1 %vm394_vm13, %v457_v15 }
  0xec   :  { %397 = vmatpush1.bf16.msk.msra.mxu1 %vm396_vm11, %v457_v15 }
  0xed   :  { %400 = vmatprep.subr.msk.bf16.mxu1 %vm48_vm0, %v213_v21 }
  0xef   :  { %398 = vmatmul.mubr.msk.bf16.vlgmr.msra.gmra.mrb[0].mxu1 %vm136_vm14, %v23_v23 }
  0xf0   :  { %221 = vmatpush1.bf16.msra.mxu1 %v215_v24  ;;  %252 = vmatprep.mubr.bf16.mxu1 %v456_v3 }
  0xf7   :  { %401 = vmatmul.mubr.msk.bf16.vlgmr.msra.gmra.mrb[4].mxu1 %vm41_vm1, %v429_v6 }
  0xf8   :  { %262 = vmatprep.mubr.bf16.mxu1 %v456_v3 }
  0xff   :  { %402 = vmatmul.mubr.msk.bf16.gmra.mrb[8].mxu1 %vm41_vm1, %v430_v7 }
 0x1c2   :  { %v174_v25 = vpop.f32.mrb[0].mxu1 }
 0x1c3   :  { %v182_v27 = vmul.f32 0.8, %v174_v25  ;;  %v176_v28 = vpop.f32.mrb[1].mxu1 }
 0x1c4   :  { %v183_v29 = vmul.f32 0.8, %v176_v28  ;;  %v178_v30 = vpop.f32.mrb[2].mxu1 }
 0x1c5   :  { %v179_v31 = vpop.f32.mrb[3].mxu1  ;;  %v189_v32 = vadd.f32 %v187_v26, %v182_v27 }
 0x1c6   :  { %v190_v33 = vadd.f32 %v187_v26, %v183_v29 }
 0x1c7   :  { %v191_v34 = vmul.f32 %v189_v32, %v189_v32 }
 0x1c8   :  { %v192_v35 = vmul.f32 %v190_v33, %v190_v33 }
 0x1c9   :  { %v194_v36 = vsel %vm193_vm15, %v191_v34, 0.0 }
 0x1ca   :  { %v254_v37 = vpop.f32.mrb[4].mxu1  ;;  %v195_v38 = vsel %vm193_vm15, %v192_v35, 0.0 }
 0x1cb   :  { %v256_v39 = vpop.f32.mrb[5].mxu1  ;;  %v196_v40 = vadd.f32 %v195_v38, %v194_v36  ;;  %vm273_vm0 = vcmp.gt.f32.partialorder %v254_v37, 0.0 }
 0x1cc   :  { %v258_v41 = vpop.f32.mrb[6].mxu1  ;;  %vm274_vm2 = vcmp.gt.f32.partialorder %v256_v39, 0.0 }
 0x1cd   :  { %vm275_vm1 = vcmp.gt.f32.partialorder %v258_v41, 0.0  ;;  %197 = vadd.xlane.f32.xlu0 %v196_v40  ;;  %v260_v42 = vpop.f32.mrb[7].mxu1 }
 0x1ce   :  { %vm413_vm3 = vmpackc.low %vm275_vm1, %vm273_vm0  ;;  %vm276_vm4 = vcmp.gt.f32.partialorder %v260_v42, 0.0 }
 0x1cf   :  { %vm411_vm5 = vmpackc.low %vm276_vm4, %vm274_vm2 }
 0x1d0   :  { %412 = vmatprep.subr.msk.bf16.mxu0 %vm411_vm5, %v457_v15 }
 0x1d1   :  { %414 = vmatpush1.bf16.msk.msra.mxu0 %vm413_vm3, %v457_v15 }
 0x1d2   :  { %v264_v43 = vpop.f32.mrb[8].mxu1 }
 0x1d3   :  { %v266_v44 = vpop.f32.mrb[9].mxu1  ;;  %vm277_vm6 = vcmp.gt.f32.partialorder %v264_v43, 0.0 }
 0x1d4   :  { %v268_v45 = vpop.f32.mrb[10].mxu1  ;;  %vm278_vm8 = vcmp.gt.f32.partialorder %v266_v44, 0.0 }
 0x1d5   :  { %vm279_vm7 = vcmp.gt.f32.partialorder %v268_v45, 0.0  ;;  %v270_v46 = vpop.f32.mrb[11].mxu1 }
 0x1d6   :  { %vm417_vm9 = vmpackc.low %vm279_vm7, %vm277_vm6  ;;  %vm280_vm10 = vcmp.gt.f32.partialorder %v270_v46, 0.0 }
 0x1d7   :  { %vm415_vm11 = vmpackc.low %vm280_vm10, %vm278_vm8 }
 0x1d8   :  { %416 = vmatprep.subr.msk.bf16.mxu0 %vm415_vm11, %v457_v15 }
 0x1d9   :  { %418 = vmatpush1.bf16.msk.msra.mxu0 %vm417_vm9, %v457_v15 }
 0x1dc   :  { %419 = vmatmul.mubr.msk.bf16.vlgmr.msra.gmra.mrb[8].mxu0 %vm136_vm14, %v23_v23 }
 0x25a   :  { %v198_v47 = vpop.xlane.xlu0 %197 }
 0x25b   :  { %v199_v48 = vrot.slane %v198_v47, 4 }
 0x25d   :  { %v200_v49 = vadd.f32 %v199_v48, %v198_v47 }
 0x25f   :  { %v201_v50 = vrot.slane %v200_v49, 2 }
 0x261   :  { %v202_v51 = vadd.f32 %v201_v50, %v200_v49 }
 0x263   :  { %v203_v52 = vrot.slane %v202_v51, 1 }
 0x265   :  { %v204_v53 = vadd.f32 %v203_v52, %v202_v51 }
 0x267   :  { %420 = vpush %v204_v53 }
 0x298   :  { %s421_s2 = spop %420 }
 0x2af   :  { %v335_v54 = vpop.f32.mrb[8].mxu0 }
 0x2b0   :  { %v342_v55 = vmul.f32 0.8, %v335_v54  ;;  %v337_v56 = vpop.f32.mrb[9].mxu0 }
 0x2b1   :  { %v343_v57 = vmul.f32 0.8, %v337_v56  ;;  %v339_v58 = vpop.f32.mrb[10].mxu0 }
 0x2b2   :  { %v344_v59 = vadd.f32 %v342_v55, %v187_v26  ;;  %v340_v60 = vpop.f32.mrb[11].mxu0 }
 0x2b3   :  { %v345_v61 = vadd.f32 %v343_v57, %v187_v26 }
 0x2b4   :  { %v346_v62 = vmul.f32 %v344_v59, %v344_v59 }
 0x2b5   :  { %v347_v63 = vmul.f32 %v345_v61, %v345_v61 }
 0x2b6   :  { %v348_v0 = vsel %vm193_vm15, %v346_v62, 0.0 }
 0x2b7   :  { %v349_v1 = vsel %vm193_vm15, %v347_v63, 0.0 }
 0x2b8   :  { %v350_v2 = vadd.f32 %v349_v1, %v348_v0 }
 0x2ba   :  { %351 = vadd.xlane.f32.xlu1 %v350_v2 }
 0x347   :  { %v352_v3 = vpop.xlane.xlu1 %351 }
 0x348   :  { %v353_v4 = vrot.slane %v352_v3, 4 }
 0x34a   :  { %v354_v5 = vadd.f32 %v353_v4, %v352_v3 }
 0x34c   :  { %v355_v6 = vrot.slane %v354_v5, 2 }
 0x34e   :  { %v356_v7 = vadd.f32 %v355_v6, %v354_v5 }
 0x350   :  { %v357_v8 = vrot.slane %v356_v7, 1 }
 0x352   :  { %v358_v9 = vadd.f32 %v357_v8, %v356_v7 }
 0x354   :  { %422 = vpush %v358_v9 }
 0x385   :  { %s423_s26 = spop %422 }
 0x386   :  { %s360_s27 = sadd.f32 %s423_s26, %s421_s2 }
 0x388   :  { %v361_v10 = vstv %s360_s27 }
 0x389   :  { %362 = vst [vmem:[#allocation2] sm:$0x1] %v361_v10 }
 0x38a   :  { %443 = shalt.err (!%p440_p4)
}
 0x38b   :  { %s444_s6 = scalar_lea.hbm %s540_s4, 16 }
 0x38c   :  { %p445_p5 = scmp.ne.s32.totalorder %s540_s4, %s444_s6  ;;  %p448_p6 = scmp.lt.u32.totalorder %s444_s6, %s540_s4 }
 0x38e   :  { %p450_p7 = pnand %p448_p6, %p445_p5 }
 0x390   :  { %453 = shalt.err (!%p450_p7)
}
 0x391   :  { %372 = dma.vmem_to_hbm [thread:$0]  %s370_s25, 16, %s540_s4, [#allocation3]  }
 0x392   :  { %454 = dma.done.wait [#allocation3], 16  }
 0x393   :  { %455 = vsyncadd [#allocation3], 4294967280 }
 0x394   :  { %376 = vsyncpa [#allocation3], 1 }

</bundles_post_ra>
